<compile_context>
chip_gen: v7x
topology: tpu7x:2x2x1
jax: 0.10.0
libtpu: 0.0.40
codegen_flags: <defaults>
</compile_context>

<pallas_src>
import jax
import jax.numpy as jnp
from jax.experimental import pallas as pl
from jax.experimental.pallas import tpu as pltpu


def _makeup_kernel(w_ref, feat_ref, mask_ref, out_ref):
    # w_ref:    SMEM (3,) float32  [eyes_weight, lips_weight, skin_weight]
    # feat_ref: VMEM (1, C, th, W) feature dtype
    # mask_ref: VMEM (1, 1, th, W) native mask dtype (int or float)
    # out_ref:  VMEM (1, C, th, W) feature dtype
    mask = mask_ref[...]  # compare directly in the native dtype

    # Per-pixel scale, computed once (not per channel), then broadcast over C.
    # (For finite features this equals the unfactored reference exactly; it
    # differs only in 0*Inf/NaN propagation for non-matching regions.)
    scale = jnp.where(
        mask == 1, w_ref[0],
        jnp.where(mask == 2, w_ref[1],
                  jnp.where(mask == 3, w_ref[2], jnp.float32(0.0))))

    out_ref[...] = (feat_ref[...] * scale).astype(out_ref.dtype)


def _plan_h_tile(B, C, H, W, feat_bytes, mask_bytes,
                 budget_bytes=16 * 1024 * 1024):
    """Pick an H tile so the double-buffered resident set fits `budget_bytes`.

    Resident set per H row (lane dim padded to a multiple of 128):
        2 buffers * (feat-in block + out block)  = 2 * 2 * C * padW * feat_bytes
        2 buffers * mask block                   = 2 * 1 * padW * mask_bytes
    Returns (h_tile, n_h, peak_vmem_bytes).
    """
    pad_w = max(128, ((W + 127) // 128) * 128)
    per_h = 2 * (2 * C * pad_w * feat_bytes + pad_w * mask_bytes)

    rows = budget_bytes // max(per_h, 1)
    if rows >= H:
        h_tile = H                       # full dim block is always legal
    else:
        h_tile = max(8, (rows // 8) * 8)  # multiple of 8; ragged last block ok
        h_tile = min(h_tile, H)
    n_h = pl.cdiv(H, h_tile)

    # v7x megacore: guarantee >= 2 "parallel" grid steps so both TensorCores
    # get work (B >= 2 already satisfies it; prefer an even step count).
    if B * n_h < 2 and H >= 16:
        h_tile = (((H + 1) // 2 + 7) // 8) * 8
        n_h = pl.cdiv(H, h_tile)

    peak_vmem = per_h * h_tile
    return h_tile, n_h, peak_vmem


def fine_grained_makeup(makeup_features, face_mask, weights):
    """weights: float32 array of shape (3,) = [eyes, lips, skin]."""
    B, C, H, W = makeup_features.shape
    assert face_mask.shape == (B, 1, H, W), "face_mask must be (B, 1, H, W)"
    weights = jnp.asarray(weights, dtype=jnp.float32).reshape(3)

    feat_bytes = makeup_features.dtype.itemsize
    mask_bytes = face_mask.dtype.itemsize

    h_tile, n_h, peak_vmem = _plan_h_tile(B, C, H, W, feat_bytes, mask_bytes)

    grid_spec = pltpu.PrefetchScalarGridSpec(
        num_scalar_prefetch=1,  # weights -> SMEM
        grid=(B, n_h),
        in_specs=[
            pl.BlockSpec((1, C, h_tile, W), lambda b, t, w: (b, 0, t, 0)),
            pl.BlockSpec((1, 1, h_tile, W), lambda b, t, w: (b, 0, t, 0)),
        ],
        out_specs=pl.BlockSpec((1, C, h_tile, W), lambda b, t, w: (b, 0, t, 0)),
    )

    elems = B * C * H * W
    cost = pl.CostEstimate(
        flops=elems,                 # one multiply per output element
        transcendentals=0,
        bytes_accessed=2 * elems * feat_bytes + B * H * W * mask_bytes,
    )

    # Only raise the scoped-VMEM limit above the most conservative default
    # (16 MiB on v5e) when the planned peak actually requires it; never set
    # it lower than the default.  Peak stays well under v7x's 64 MiB VMEM.
    vmem_limit = None
    needed = int(peak_vmem * 1.3)
    if needed > 16 * 1024 * 1024:
        vmem_limit = needed

    out = pl.pallas_call(
        _makeup_kernel,
        out_shape=jax.ShapeDtypeStruct((B, C, H, W), makeup_features.dtype),
        grid_spec=grid_spec,
        compiler_params=pltpu.CompilerParams(
            dimension_semantics=("parallel", "parallel"),
            vmem_limit_bytes=vmem_limit,
        ),
        cost_estimate=cost,
    )(weights, makeup_features, face_mask)

    return out


def reference(makeup_features, face_mask, weights):
    eye_mask = (face_mask == 1).astype(jnp.float32)
    lips_mask = (face_mask == 2).astype(jnp.float32)
    skin_mask = (face_mask == 3).astype(jnp.float32)
    return (
        weights[0] * eye_mask * makeup_features
        + weights[1] * lips_mask * makeup_features
        + weights[2] * skin_mask * makeup_features
    )


if __name__ == "__main__":
    key = jax.random.PRNGKey(0)
    k_feat, k_mask = jax.random.split(key)

    B, C, H, W = 2, 4, 16, 16
    makeup_features = jax.random.normal(k_feat, (B, C, H, W), dtype=jnp.float32)
    face_mask = jax.random.randint(k_mask, (B, 1, H, W), 0, 4, dtype=jnp.int32)

    # nn.Parameter(torch.tensor(1.0)) x3 -> use non-trivial values to exercise
    # the weighting path.
    weights = jnp.array([0.5, 1.5, 2.0], dtype=jnp.float32)

    out = fine_grained_makeup(makeup_features, face_mask, weights)
    out = jax.block_until_ready(out)

    ref = reference(makeup_features, face_mask, weights)
    assert out.shape == (B, C, H, W)
    assert jnp.allclose(out, ref, atol=1e-6), "mismatch vs reference"

    print("KERNEL_OK")
</pallas_src>

<mosaic_0001>
module attributes {stable_mosaic.version = 11 : i64} {
  func.func @_makeup_kernel(%arg0: i32, %arg1: i32, %arg2: memref<3xf32, #tpu.memory_space<smem>>, %arg3: memref<1x4x16x16xf32, #tpu.memory_space<vmem>>, %arg4: memref<1x1x16x16xi32, #tpu.memory_space<vmem>>, %arg5: memref<1x4x16x16xf32, #tpu.memory_space<vmem>>) attributes {dimension_semantics = [#tpu.dimension_semantics<parallel>, #tpu.dimension_semantics<parallel>], iteration_bounds = array<i64: 2, 1>, scalar_prefetch = 1 : i64, scratch_operands = 0 : i64, tpu.core_type = #tpu.core_type<tc>, window_params = [{transform_indices = @transform_0, window_bounds = array<i64: 1, 4, 16, 16>}, {transform_indices = @transform_1, window_bounds = array<i64: 1, 1, 16, 16>}, {transform_indices = @transform_2, window_bounds = array<i64: 1, 4, 16, 16>}]} {
    %c0 = arith.constant 0 : index
    %c0_0 = arith.constant 0 : index
    %c0_1 = arith.constant 0 : index
    %c0_2 = arith.constant 0 : index
    %0 = vector.load %arg4[%c0, %c0_0, %c0_1, %c0_2] : memref<1x1x16x16xi32, #tpu.memory_space<vmem>>, vector<1x1x16x16xi32>
    %c1_i32 = arith.constant 1 : i32
    %1 = vector.broadcast %c1_i32 : i32 to vector<1x1x16x16xi32>
    %2 = arith.cmpi eq, %0, %1 : vector<1x1x16x16xi32>
    %c0_3 = arith.constant 0 : index
    %3 = memref.load %arg2[%c0_3] : memref<3xf32, #tpu.memory_space<smem>>
    %c2_i32 = arith.constant 2 : i32
    %4 = vector.broadcast %c2_i32 : i32 to vector<1x1x16x16xi32>
    %5 = arith.cmpi eq, %0, %4 : vector<1x1x16x16xi32>
    %c1 = arith.constant 1 : index
    %6 = memref.load %arg2[%c1] : memref<3xf32, #tpu.memory_space<smem>>
    %c3_i32 = arith.constant 3 : i32
    %7 = vector.broadcast %c3_i32 : i32 to vector<1x1x16x16xi32>
    %8 = arith.cmpi eq, %0, %7 : vector<1x1x16x16xi32>
    %c2 = arith.constant 2 : index
    %9 = memref.load %arg2[%c2] : memref<3xf32, #tpu.memory_space<smem>>
    %cst = arith.constant 0.000000e+00 : f32
    %10 = vector.broadcast %9 : f32 to vector<1x1x16x16xf32>
    %11 = vector.broadcast %cst : f32 to vector<1x1x16x16xf32>
    %12 = arith.select %8, %10, %11 : vector<1x1x16x16xi1>, vector<1x1x16x16xf32>
    %13 = vector.broadcast %6 : f32 to vector<1x1x16x16xf32>
    %14 = arith.select %5, %13, %12 : vector<1x1x16x16xi1>, vector<1x1x16x16xf32>
    %15 = vector.broadcast %3 : f32 to vector<1x1x16x16xf32>
    %16 = arith.select %2, %15, %14 : vector<1x1x16x16xi1>, vector<1x1x16x16xf32>
    %c0_4 = arith.constant 0 : index
    %c0_5 = arith.constant 0 : index
    %c0_6 = arith.constant 0 : index
    %c0_7 = arith.constant 0 : index
    %17 = vector.load %arg3[%c0_4, %c0_5, %c0_6, %c0_7] : memref<1x4x16x16xf32, #tpu.memory_space<vmem>>, vector<1x4x16x16xf32>
    %18 = vector.broadcast %16 : vector<1x1x16x16xf32> to vector<1x4x16x16xf32>
    %19 = arith.mulf %17, %18 : vector<1x4x16x16xf32>
    %c0_8 = arith.constant 0 : index
    %c0_9 = arith.constant 0 : index
    %c0_10 = arith.constant 0 : index
    %c0_11 = arith.constant 0 : index
    %20 = vector.load %arg5[%c0_8, %c0_9, %c0_10, %c0_11] : memref<1x4x16x16xf32, #tpu.memory_space<vmem>>, vector<1x4x16x16xf32>
    tpu.vector_store %arg5[%c0_8, %c0_9, %c0_10, %c0_11], %19 {strides = array<i32>} : memref<1x4x16x16xf32, #tpu.memory_space<vmem>>, vector<1x4x16x16xf32>,
    return
  }
  func.func @transform_0(%arg0: i32, %arg1: i32, %arg2: memref<3xf32, #tpu.memory_space<smem>>) -> (i32, i32, i32, i32) {
    %c0_i32 = arith.constant 0 : i32
    %c0_i32_0 = arith.constant 0 : i32
    %c0_i32_1 = arith.constant 0 : i32
    return %arg0, %c0_i32, %arg1, %c0_i32_0 : i32, i32, i32, i32
  }
  func.func @transform_1(%arg0: i32, %arg1: i32, %arg2: memref<3xf32, #tpu.memory_space<smem>>) -> (i32, i32, i32, i32) {
    %c0_i32 = arith.constant 0 : i32
    %c0_i32_0 = arith.constant 0 : i32
    %c0_i32_1 = arith.constant 0 : i32
    return %arg0, %c0_i32, %arg1, %c0_i32_0 : i32, i32, i32, i32
  }
  func.func @transform_2(%arg0: i32, %arg1: i32, %arg2: memref<3xf32, #tpu.memory_space<smem>>) -> (i32, i32, i32, i32) {
    %c0_i32 = arith.constant 0 : i32
    %c0_i32_0 = arith.constant 0 : i32
    %c0_i32_1 = arith.constant 0 : i32
    return %arg0, %c0_i32, %arg1, %c0_i32_0 : i32, i32, i32, i32
  }
}

</mosaic_0001>

<bundles_post_ra>
// kernel: tpu_custom_call.1
= control target key start
LH: loop header
LB: loop body
LE: loop exit
PB: predicated region body
PF: predicated region fallthrough
CT: control target
= control target key end

     0   :  { %s956_s0 = inlined_call_operand.hbm [shape: f32[3], index: 0, kind: input, shape index: {}]   ;;  %s957_s1 = inlined_call_operand.hbm [shape: f32[2,4,16,16], index: 1, kind: input, shape index: {}]   ;;  %s958_s2 = inlined_call_operand.hbm [shape: s32[2,1,16,16], index: 2, kind: input, shape index: {}]   ;;  %s959_s3 = inlined_call_operand.hbm [shape: f32[2,4,16,16], index: 3, kind: output, shape index: {}]  }
   0x1   :  { %s502_s14 = scalar_lea.hbm %s956_s0, 16 }
   0x2   :  { %p503_p0 = scmp.ne.s32.totalorder %s956_s0, %s502_s14  ;;  %p506_p1 = scmp.lt.u32.totalorder %s502_s14, %s956_s0 }
   0x4   :  { %p508_p2 = pnand %p506_p1, %p503_p0 }
   0x6   :  { %511 = shalt.err (!%p508_p2)  }
   0x7   :  { %s662_s19 = smov [#allocation3]  }
   0x8   :  { %9 = dma.hbm_to_smem %s956_s0, 16, %s662_s19, [#allocation2] }
   0x9   :  { %624 = dma.done.wait [#allocation2], 16 }
   0xa   :  { %625 = vsyncadd [#allocation2], 4294967280 }
   0xb   :  { %11 = sfence }
   0xc   :  { %12 = vsyncpa [#allocation5], 0 }
   0xd   :  { %14 = vsyncpa [#allocation5 + $0x1], 0 }
   0xe   :  { %15 = vsyncpa [#allocation8], 0 }
   0xf   :  { %17 = vsyncpa [#allocation8 + $0x1], 0 }
  0x10   :  { %18 = vsyncpa [#allocation6], 0 }
  0x11   :  { %20 = vsyncpa [#allocation6 + $0x1], 0  ;;  %s702_s22 = smov 0   ;;  %s704_s23 = smov 0  }
  0x12   :  { %s706_s24 = smov 0   ;;  %s708_s25 = smov 0  }
  0x13   :  { %s710_s26 = smov 0   ;;  %s712_s0 = smov 0  }
  0x14 LB: > { %s406_s27 = sadd.s32 4294967295, %s660_s0   ;;  %s407_s28 = sadd.s32 4294967294, %s660_s0   ;;  %s660_s0 = sphi %s712_s0, %s26_s0   ;;  %s656_s26 = sphi %s710_s26, %s977_s26   ;;  %s652_s25 = sphi %s708_s25, %s976_s25   ;;  %s648_s24 = sphi %s706_s24, %s975_s24   ;;  %s644_s23 = sphi %s704_s23, %s974_s23   ;;  %s640_s22 = sphi %s702_s22, %s973_s22  }
  0x15   : > { %s38_s29 = sadd.s32 1, %s656_s26  ;;  %s47_s30 = sadd.s32 1, %s648_s24 }
  0x16   : > { %p40_p3 = scmp.ge.s32.totalorder %s38_s29, 2  ;;  %p54_p4 = scmp.ne.s32.totalorder %s648_s24, %s644_s23 }
  0x17   : > { %p55_p5 = scmp.eq.s32.totalorder %s660_s0, 0  ;;  %p60_p6 = scmp.ne.s32.totalorder %s644_s23, %s640_s22 }
  0x18   : > { %s979_s29 = smov (%p40_p3, %s38_s29), 0  ;;  %p61_p8 = scmp.eq.s32.totalorder %s406_s27, 0 }
  0x19   : > { %p743_p7 = por %p55_p5, %p54_p4  ;;  %s42_s5 = ssub.s32 %s656_s26, %s979_s29 }
  0x1a   : > { %p114_p9 = scmp.eq.s32.totalorder %s406_s27, 1  ;;  %p45_p10 = scmp.eq.s32.totalorder %s42_s5, 0 }
  0x1b   : > { %p749_p11 = por %p61_p8, %p60_p6  ;;  %p120_p13 = scmp.eq.s32.totalorder %s407_s28, 1 }
  0x1c   : > { %p753_p12 = por %p114_p9, %p54_p4  ;;  %p447_p2 = scmp.lt.s32.totalorder %s660_s0, 2 }
  0x1d   : > { %s963_s6 = scalar_select %p749_p11, 1, 0 }
  0x1e   : > { %s964_s7 = scalar_select %p753_p12, 1, 0 }
  0x1f   : > { %s758_s8 = scalar_select %p45_p10, %s648_s24, %s47_s30  }
  0x20   : > { %p760_p0 = por %p120_p13, %p60_p6  ;;  %s767_s10 = sand.u32 1, %s648_s24  }
  0x21   : > { %s410_s11 = sshll.u32 %s767_s10, 6  ;;  %s427_s12 = sshll.u32 %s656_s26, 10 }
  0x22   : > { %s965_s9 = scalar_select %p760_p0, 1, 0 }
  0x23   : > { %s774_s15 = scalar_lea.hbm %s957_s1, %s427_s12  ;;  %s144_s16 = scalar_lea.vmem [#allocation4], %s410_s11 }
  0x24   : > { %s153_s17 = sshll.u32 %s144_s16, 4  ;;  %p780_p3 = pnand %p447_p2, %p743_p7  ;;  %s776_s17 = int_to_ptr.vmem [resolvable:$true] %s153_s17 }
  0x25   : > { %s141_s19 = scalar_lea.sflag [#allocation5], %s767_s10  ;;  %s512_s20 = scalar_lea.hbm %s774_s15, 1024 }
  0x26   : > { %p513_p5 = scmp.ne.s32.totalorder %s774_s15, %s512_s20  ;;  %p514_p6 = pneg %p780_p3 }
  0x27   : > { %s517_s28 = scalar_lea.hbm %s957_s1, 2048  ;;  %p518_p7 = scmp.lt.u32.totalorder %s774_s15, %s957_s1 }
  0x28   : > { %p515_p8 = pnand %p514_p6, %p513_p5  ;;  %p519_p10 = scmp.lt.u32.totalorder %s517_s28, %s512_s20 }
  0x29   : > { %p521_p2 = scmp.lt.u32.totalorder %s512_s20, %s774_s15 }
  0x2a   : > { %p516_p9 = pneg %p515_p8  ;;  %p520_p13 = por %p519_p10, %p518_p7 }
  0x2c   : > { %p522_p1 = por %p521_p2, %p520_p13 }
  0x2e   : > { %p523_p4 = pnand %p522_p1, %p516_p9 }
  0x30   : > { %526 = shalt.err (!%p523_p4)
}
  0x31   : > { %s527_s5 = scalar_lea.vmem %s776_s17, 1024  ;;  %s663_s11 = smov [#allocation4]  }
  0x32   : > { %p528_p5 = scmp.ne.s32.totalorder %s776_s17, %s527_s5  ;;  %s532_s12 = sshll.u32 %s663_s11, 4  ;;  %s533_s12 = int_to_ptr.vmem [resolvable:$false] %s532_s12 }
  0x33   : > { %s534_s13 = scalar_lea.vmem %s533_s12, 2048  ;;  %p535_p12 = scmp.lt.s32.totalorder %s776_s17, %s533_s12 }
  0x34   : > { %p530_p8 = pnand %p528_p5, %p514_p6  ;;  %p536_p7 = scmp.lt.s32.totalorder %s534_s13, %s527_s5 }
  0x36   : > { %p531_p0 = pneg %p530_p8  ;;  %p537_p10 = por %p536_p7, %p535_p12 }
  0x38   : > { %p538_p13 = pnand %p537_p10, %p531_p0 }
  0x3a   : > { %541 = shalt.err (!%p538_p13)
}
  0x3b   : > { %s664_s14 = smov 128   ;;  %s665_s16 = smov 8  }
  0x3c   : > { %439 = dma.hbm_to_vmem [thread:$0]  (!%p780_p3), %s774_s15, 1024, %s776_s17, %s141_s19, %s664_s14, %s664_s14, %s665_s16  }
  0x3d   : > { %p184_p12 = scmp.lt.s32.totalorder %s660_s0, 3  ;;  %s413_s20 = sshll.u32 %s767_s10, 4 }
  0x3e   : > { %s428_s21 = sshll.u32 %s656_s26, 8  ;;  %p967_p0 = scmp.ge.s32.totalorder %s660_s0, 1 }
  0x3f   : > { %s828_s4 = scalar_lea.hbm %s958_s2, %s428_s21  ;;  %s167_s5 = scalar_lea.vmem [#allocation7], %s413_s20 }
  0x40   : > { %p821_p1 = pnand %p967_p0, %p184_p12  ;;  %s176_s11 = sshll.u32 %s167_s5, 4  ;;  %s830_s11 = int_to_ptr.vmem [resolvable:$true] %s176_s11 }
  0x41   : > { %s164_s15 = scalar_lea.sflag [#allocation8], %s767_s10  ;;  %s542_s17 = scalar_lea.hbm %s828_s4, 256 }
  0x42   : > { %p543_p4 = scmp.ne.s32.totalorder %s828_s4, %s542_s17  ;;  %s547_s13 = scalar_lea.hbm %s958_s2, 512 }
  0x43   : > { %p548_p5 = scmp.lt.u32.totalorder %s828_s4, %s958_s2  ;;  %p549_p8 = scmp.lt.u32.totalorder %s547_s13, %s542_s17 }
  0x44   : > { %p545_p9 = pnand %p543_p4, %p514_p6  ;;  %p551_p10 = scmp.lt.u32.totalorder %s542_s17, %s828_s4 }
  0x45   : > { %p550_p7 = por %p549_p8, %p548_p5 }
  0x46   : > { %p546_p2 = pneg %p545_p9 }
  0x47   : > { %p552_p13 = por %p551_p10, %p550_p7 }
  0x49   : > { %p553_p12 = pnand %p552_p13, %p546_p2 }
  0x4b   : > { %556 = shalt.err (!%p553_p12)
}
  0x4c   : > { %s557_s20 = scalar_lea.vmem %s830_s11, 256  ;;  %s666_s30 = smov [#allocation7]  }
  0x4d   : > { %p558_p0 = scmp.ne.s32.totalorder %s830_s11, %s557_s20  ;;  %s562_s5 = sshll.u32 %s666_s30, 4  ;;  %s563_s5 = int_to_ptr.vmem [resolvable:$false] %s562_s5 }
  0x4e   : > { %s564_s19 = scalar_lea.vmem %s563_s5, 512  ;;  %p565_p11 = scmp.lt.s32.totalorder %s830_s11, %s563_s5 }
  0x4f   : > { %p560_p4 = pnand %p558_p0, %p514_p6  ;;  %p566_p5 = scmp.lt.s32.totalorder %s564_s19, %s557_s20 }
  0x51   : > { %p561_p9 = pneg %p560_p4  ;;  %p567_p8 = por %p566_p5, %p565_p11 }
  0x53   : > { %p568_p7 = pnand %p567_p8, %p561_p9 }
  0x55   : > { %571 = shalt.err (!%p568_p7)
}
  0x56   : > { %442 = dma.hbm_to_vmem [thread:$0]  (!%p780_p3), %s828_s4, 256, %s830_s11, %s164_s15, %s664_s14, %s664_s14, %s665_s16  }
  0x57   : > { %188 = sbr.rel (%p821_p1) target bundleno = 129 (0x81), region = 28  ;;  %s864_s17 = sand.u32 (!%p821_p1), 1, %s644_s23  }
  0x58   : > { %s417_s12 = sshll.u32 (!%p821_p1), %s864_s17, 6  ;;  %s191_s13 = scalar_lea.sflag (!%p821_p1), [#allocation5], %s864_s17 }
  0x59   : > { %s868_s18 = scalar_lea.vmem (!%p821_p1), [#allocation4], %s417_s12  ;;  %p969_p11 = scmp.ne.s32.totalorder (!%p821_p1), %s963_s6, 0 }
  0x5e   : > { %627 = dma.done.wait (%p969_p11), %s191_s13, 1024  }
  0x5f   : > { %629 = vsyncadd (%p969_p11), %s191_s13, 4294966272  ;;  %s418_s10 = sshll.u32 %s864_s17, 4  ;;  %s200_s14 = scalar_lea.sflag [#allocation8], %s864_s17 }
  0x60   : > { %s203_s16 = scalar_lea.vmem [#allocation7], %s418_s10 }
  0x61   : > { %631 = dma.done.wait (%p969_p11), %s200_s14, 256  }
  0x62   : > { %633 = vsyncadd (%p969_p11), %s200_s14, 4294967040  ;;  %s880_s27 = sld [smem:[#allocation3]]  ;;  %s420_s4 = sld [smem:[#allocation3 + $0x1]]  ;;  %v232_v0 = vld [vmem:[%s203_s16] sm:$0xff]  ;;  %v233_v5 = vld [vmem:[%s203_s16 + $0x8] sm:$0xff]  ;;  %vm268_vm6 = vcmask 130048  }
  0x63   : > { %s421_s11 = sld [smem:[#allocation3 + $0x2]]  ;;  %vm234_vm0 = vcmp.eq.s32.totalorder %v232_v0, 1  ;;  %vm237_vm1 = vcmp.eq.s32.totalorder %v232_v0, 2  ;;  %vm240_vm2 = vcmp.eq.s32.totalorder %v232_v0, 3  ;;  %v252_v4 = vld [vmem:[%s868_s18] sm:$0xff]  ;;  %v253_v6 = vld [vmem:[%s868_s18 + $0x8] sm:$0xff] }
  0x64   : > { %vm235_vm3 = vcmp.eq.s32.totalorder %v233_v5, 1  ;;  %vm238_vm4 = vcmp.eq.s32.totalorder %v233_v5, 2  ;;  %vm241_vm5 = vcmp.eq.s32.totalorder %v233_v5, 3  ;;  %v254_v8 = vld [vmem:[%s868_s18 + $0x10] sm:$0xff]  ;;  %v256_v9 = vld [vmem:[%s868_s18 + $0x20] sm:$0xff]  ;;  %s228_s6 = scalar_lea.vmem [#allocation9], %s417_s12 }
  0x65   : > { %s293_s15 = sshll.u32 %s228_s6, 4  ;;  %v255_v12 = vld [vmem:[%s868_s18 + $0x18] sm:$0xff]  ;;  %v257_v13 = vld [vmem:[%s868_s18 + $0x28] sm:$0xff]  ;;  %v258_v14 = vld [vmem:[%s868_s18 + $0x30] sm:$0xff]  ;;  %s429_s21 = sshll.u32 %s652_s25, 10  ;;  %s894_s15 = int_to_ptr.vmem [resolvable:$true] %s293_s15 }
  0x66   : > { %v259_v17 = vld [vmem:[%s868_s18 + $0x38] sm:$0xff]  ;;  %s899_s20 = scalar_lea.hbm %s959_s3, %s429_s21  ;;  %s278_s30 = scalar_lea.sflag [#allocation6], %s864_s17 }
  0x67   : > { %s572_s5 = scalar_lea.vmem %s894_s15, 1024  ;;  %p970_p6 = scmp.ne.s32.totalorder %s964_s7, 0 }
  0x68   : > { %v246_v1 = vstv %s420_s4  ;;  %v249_v2 = vstv %s880_s27  ;;  %p573_p3 = scmp.ne.s32.totalorder %s894_s15, %s572_s5  ;;  %s667_s19 = smov [#allocation9]  }
  0x69   : > { %v243_v3 = vstv %s421_s11  ;;  %s576_s12 = sshll.u32 %s667_s19, 4  ;;  %s577_s12 = int_to_ptr.vmem [resolvable:$false] %s576_s12 }
  0x6a   : > { %v244_v7 = vsel %vm240_vm2, %v243_v3, 0.0  ;;  %v245_v11 = vsel %vm241_vm5, %v243_v3, 0.0  ;;  %p574_p1 = pnand %p573_p3, %p970_p6  ;;  %s578_s13 = scalar_lea.vmem %s577_s12, 2048 }
  0x6b   : > { %v247_v10 = vsel %vm237_vm1, %v246_v1, %v244_v7  ;;  %v248_v16 = vsel %vm238_vm4, %v246_v1, %v245_v11  ;;  %p579_p10 = scmp.lt.s32.totalorder %s894_s15, %s577_s12  ;;  %p580_p13 = scmp.lt.s32.totalorder %s578_s13, %s572_s5 }
  0x6c   : > { %v250_v15 = vsel %vm234_vm0, %v249_v2, %v247_v10  ;;  %v251_v19 = vsel %vm235_vm3, %v249_v2, %v248_v16  ;;  %p575_p2 = pneg %p574_p1 }
  0x6d   : > { %v260_v18 = vmul.f32 %v252_v4, %v250_v15  ;;  %v262_v20 = vmul.f32 %v254_v8, %v250_v15  ;;  %v264_v21 = vmul.f32 %v256_v9, %v250_v15  ;;  %v261_v22 = vmul.f32 %v253_v6, %v251_v19  ;;  %p581_p12 = por %p580_p13, %p579_p10 }
  0x6e   : > { %v263_v23 = vmul.f32 %v255_v12, %v251_v19  ;;  %v265_v24 = vmul.f32 %v257_v13, %v251_v19  ;;  %v266_v25 = vmul.f32 %v258_v14, %v250_v15  ;;  %v267_v26 = vmul.f32 %v259_v17, %v251_v19 }
  0x6f   : > { %269 = vst.msk [vmem:[%s228_s6] sm:$0xff] %vm268_vm6, %v260_v18  ;;  %271 = vst.msk [vmem:[%s228_s6 + $0x10] sm:$0xff] %vm268_vm6, %v262_v20  ;;  %p582_p0 = pnand %p581_p12, %p575_p2 }
  0x70   : > { %273 = vst.msk [vmem:[%s228_s6 + $0x20] sm:$0xff] %vm268_vm6, %v264_v21  ;;  %270 = vst.msk [vmem:[%s228_s6 + $0x8] sm:$0xff] %vm268_vm6, %v261_v22 }
  0x71   : > { %272 = vst.msk [vmem:[%s228_s6 + $0x18] sm:$0xff] %vm268_vm6, %v263_v23  ;;  %274 = vst.msk [vmem:[%s228_s6 + $0x28] sm:$0xff] %vm268_vm6, %v265_v24 }
  0x72   : > { %275 = vst.msk [vmem:[%s228_s6 + $0x30] sm:$0xff] %vm268_vm6, %v266_v25  ;;  %276 = vst.msk [vmem:[%s228_s6 + $0x38] sm:$0xff] %vm268_vm6, %v267_v26 }
  0x73   : > { %585 = shalt.err (!%p582_p0)
}
  0x74   : > { %s586_s18 = scalar_lea.hbm %s899_s20, 1024  ;;  %s590_s16 = scalar_lea.hbm %s959_s3, 2048 }
  0x75   : > { %p587_p4 = scmp.ne.s32.totalorder %s899_s20, %s586_s18  ;;  %p591_p8 = scmp.lt.u32.totalorder %s899_s20, %s959_s3 }
  0x76   : > { %p592_p7 = scmp.lt.u32.totalorder %s590_s16, %s586_s18  ;;  %p594_p3 = scmp.lt.u32.totalorder %s586_s18, %s899_s20 }
  0x77   : > { %p588_p9 = pnand %p587_p4, %p970_p6 }
  0x78   : > { %p593_p11 = por %p592_p7, %p591_p8 }
  0x79   : > { %p589_p5 = pneg %p588_p9 }
  0x7a   : > { %p595_p1 = por %p594_p3, %p593_p11 }
  0x7c   : > { %p596_p2 = pnand %p595_p1, %p589_p5 }
  0x7e   : > { %599 = shalt.err (!%p596_p2)
}
  0x7f   : > { %s668_s11 = smov 128   ;;  %s669_s6 = smov 8  }
  0x80   : > { %434 = dma.vmem_to_hbm [thread:$0]  (%p970_p6), %s894_s15, 1024, %s899_s20, %s278_s30, %s668_s11, %s668_s11, %s669_s6  }
  0x81 PF: > { %s308_s21 = sand.u32 1, %s640_s22   ;;  %p971_p10 = scmp.ne.s32.totalorder %s965_s9, 0 }
  0x82   : > { %p972_p13 = scmp.ge.s32.totalorder %s660_s0, 2  ;;  %s309_s25 = scalar_lea.sflag [#allocation6], %s308_s21 }
  0x84   : > { %p444_p12 = pnand %p972_p13, %p971_p10 }
  0x86   : > { %635 = dma.done.wait (!%p444_p12), %s309_s25, 1024  }
  0x87   : > { %637 = vsyncadd (!%p444_p12), %s309_s25, 4294966272  ;;  %s26_s0 = sadd.s32 1, %s660_s0   ;;  %s973_s22 = smov %s644_s23 }
  0x88   : > { %p23_p0 = scmp.ge.s32.totalorder %s26_s0, 4   ;;  %s974_s23 = smov %s648_s24 }
  0x89   : > { %s975_s24 = smov %s758_s8  ;;  %s976_s25 = smov %s656_s26 }
  0x8a   : > { %s977_s26 = smov %s979_s29  ;;  %25 = sbr.rel (!%p23_p0) target bundleno = 20 (0x14), region = 86 }
  0x91   :  { %314 = vsyncpa [#allocation5], 1 }
  0x92   :  { %316 = vsyncpa [#allocation5 + $0x1], 1 }
  0x93   :  { %317 = vsyncpa [#allocation8], 1 }
  0x94   :  { %319 = vsyncpa [#allocation8 + $0x1], 1 }
  0x95   :  { %320 = vsyncpa [#allocation6], 1 }
  0x96   :  { %322 = vsyncpa [#allocation6 + $0x1], 1 }

</bundles_post_ra>
